<compile_context>
chip_gen: v7x
topology: tpu7x:2x2x1
jax: 0.10.0
libtpu: 0.0.40
codegen_flags: <defaults>
</compile_context>

<pallas_src>
import numpy as np
import jax
import jax.numpy as jnp
from jax.experimental import pallas as pl
from jax.experimental.pallas import tpu as pltpu

_EPS = 1e-6
_MASK_FILL = -1e9


# -----------------------------------------------------------------------------
# Sinusoid table (constant buffer; matches PositionalEncoding exactly)
# -----------------------------------------------------------------------------
def make_sinusoid_table(n_position: int, d_hid: int) -> jnp.ndarray:
    pos = np.arange(n_position, dtype=np.float64)[:, None]            # (P, 1)
    hid = np.arange(d_hid)                                            # (D,)
    angle_rates = 1.0 / np.power(10000.0, 2.0 * (hid // 2) / d_hid)   # (D,)
    table = pos * angle_rates[None, :]                                # (P, D)
    table[:, 0::2] = np.sin(table[:, 0::2])
    table[:, 1::2] = np.cos(table[:, 1::2])
    return jnp.asarray(table, dtype=jnp.float32)


def _vmem_spec():
    return pl.BlockSpec(memory_space=pltpu.MemorySpace.VMEM)


def _layer_norm(y, gamma, beta):
    mean = jnp.mean(y, axis=-1, keepdims=True)
    var = jnp.mean(jnp.square(y - mean), axis=-1, keepdims=True)
    return (y - mean) * jax.lax.rsqrt(var + _EPS) * gamma + beta


# -----------------------------------------------------------------------------
# Kernel 1: positional encoding + encoder-level LayerNorm (fused)
# -----------------------------------------------------------------------------
def _prelude_kernel(x_ref, pos_ref, g_ref, b_ref, o_ref):
    # x: (B,S,D)  pos: (S,D)  g/b: (1,D)  ->  o: (B,S,D)
    y = x_ref[...] + pos_ref[...]          # (S,D) broadcasts over batch (once)
    o_ref[...] = _layer_norm(y, g_ref[...], b_ref[...]).astype(o_ref.dtype)


def positional_encoding_layer_norm(x, pos_table, gamma, beta):
    B, S, D = x.shape
    return pl.pallas_call(
        _prelude_kernel,
        out_shape=jax.ShapeDtypeStruct((B, S, D), x.dtype),
        in_specs=[_vmem_spec()] * 4,
        out_specs=_vmem_spec(),
    )(x, pos_table[:S, :], gamma.reshape(1, D), beta.reshape(1, D))


# -----------------------------------------------------------------------------
# Kernel 2: multi-head self-attention + residual + LayerNorm
# -----------------------------------------------------------------------------
def _mha_kernel(x_ref, mask_ref, wq_ref, wk_ref, wv_ref, wo_ref,
                g_ref, b_ref, o_ref, attn_ref):
    # x: (B,S,D)  mask: (B,S,S)  wq/wk: (D,H*dk)  wv: (D,H*dv)  wo: (H*dv,D)
    # g/b: (1,D)  ->  o: (B,S,D)  attn: (B,H,S,S)
    B, S, D = x_ref.shape
    H = attn_ref.shape[1]
    dk = wq_ref.shape[1] // H
    dv = wv_ref.shape[1] // H
    scale = 1.0 / (dk ** 0.5)              # 1 / temperature

    wq = wq_ref[...]
    wk = wk_ref[...]
    wv = wv_ref[...]
    wo = wo_ref[...]
    gamma = g_ref[...]
    beta = b_ref[...]

    for bi in range(B):                    # tiny static batch -> unrolled
        x = x_ref[bi, :, :]                # (S, D)
        mask_b = mask_ref[bi, :, :]        # (S, S)
        q_all = jnp.dot(x, wq, preferred_element_type=jnp.float32)   # (S, H*dk)
        k_all = jnp.dot(x, wk, preferred_element_type=jnp.float32)
        v_all = jnp.dot(x, wv, preferred_element_type=jnp.float32)

        y = jnp.zeros((S, D), jnp.float32)
        for h in range(H):                 # static head unroll; rank-2 matmuls
            qh = q_all[:, h * dk:(h + 1) * dk] * scale
            kh = k_all[:, h * dk:(h + 1) * dk]
            vh = v_all[:, h * dv:(h + 1) * dv]
            # (q / temperature) @ k^T without materializing a transpose
            s = jax.lax.dot_general(qh, kh, (((1,), (1,)), ((), ())),
                                    preferred_element_type=jnp.float32)  # (S,S)
            s = jnp.where(mask_b == 0.0, _MASK_FILL, s)
            s = s - jnp.max(s, axis=-1, keepdims=True)
            p = jnp.exp(s)
            p = p / jnp.sum(p, axis=-1, keepdims=True)
            attn_ref[bi, h, :, :] = p.astype(attn_ref.dtype)
            oh = jnp.dot(p, vh, preferred_element_type=jnp.float32)      # (S, dv)
            y = y + jnp.dot(oh, wo[h * dv:(h + 1) * dv, :],
                            preferred_element_type=jnp.float32)          # (S, D)
        y = y + x                          # residual
        o_ref[bi, :, :] = _layer_norm(y, gamma, beta).astype(o_ref.dtype)


def multi_head_attention_layer(x, mask, wq, wk, wv, wo, gamma, beta, n_head):
    B, S, D = x.shape
    out, attn = pl.pallas_call(
        _mha_kernel,
        out_shape=(jax.ShapeDtypeStruct((B, S, D), x.dtype),
                   jax.ShapeDtypeStruct((B, n_head, S, S), jnp.float32)),
        in_specs=[_vmem_spec()] * 8,
        out_specs=(_vmem_spec(), _vmem_spec()),
    )(x, mask, wq, wk, wv, wo, gamma.reshape(1, D), beta.reshape(1, D))
    return out, attn


# -----------------------------------------------------------------------------
# Kernel 3: position-wise feed-forward + residual + LayerNorm
# -----------------------------------------------------------------------------
def _ffn_kernel(x_ref, w1_ref, b1_ref, w2_ref, b2_ref, g_ref, b_ref, o_ref):
    # x: (N, D) with N = B*S (wrapper-flattened, sublane-dense)
    x = x_ref[...]
    h = jnp.maximum(
        jnp.dot(x, w1_ref[...], preferred_element_type=jnp.float32) + b1_ref[...],
        0.0)
    y = jnp.dot(h, w2_ref[...], preferred_element_type=jnp.float32) + b2_ref[...] + x
    o_ref[...] = _layer_norm(y, g_ref[...], b_ref[...]).astype(o_ref.dtype)


def position_wise_ffn_layer(x, w1, b1, w2, b2, gamma, beta):
    B, S, D = x.shape
    d_inner = w1.shape[1]
    out = pl.pallas_call(
        _ffn_kernel,
        out_shape=jax.ShapeDtypeStruct((B * S, D), x.dtype),
        in_specs=[_vmem_spec()] * 7,
        out_specs=_vmem_spec(),
    )(x.reshape(B * S, D), w1, b1.reshape(1, d_inner), w2, b2.reshape(1, D),
      gamma.reshape(1, D), beta.reshape(1, D))
    return out.reshape(B, S, D)


# -----------------------------------------------------------------------------
# Encoder forward (mirrors Encoder.forward; dropout = identity at inference)
# -----------------------------------------------------------------------------
def encoder_forward(src_seq, src_mask, params, return_attns=False):
    x = positional_encoding_layer_norm(src_seq, params["pos_table"],
                                       params["ln_g"], params["ln_b"])
    attn_list = []
    for layer in params["layers"]:
        x, attn = multi_head_attention_layer(
            x, src_mask, layer["wq"], layer["wk"], layer["wv"], layer["wo"],
            layer["attn_ln_g"], layer["attn_ln_b"], layer["n_head"])
        x = position_wise_ffn_layer(
            x, layer["w1"], layer["b1"], layer["w2"], layer["b2"],
            layer["ffn_ln_g"], layer["ffn_ln_b"])
        if return_attns:
            attn_list.append(attn)
    if return_attns:
        return x, attn_list
    return (x,)


# -----------------------------------------------------------------------------
# Plain-JAX reference (full f32 precision) for correctness checking
# -----------------------------------------------------------------------------
def _layer_norm_ref(y, gamma, beta):
    mean = jnp.mean(y, axis=-1, keepdims=True)
    var = jnp.mean(jnp.square(y - mean), axis=-1, keepdims=True)
    return (y - mean) / jnp.sqrt(var + _EPS) * gamma + beta


def encoder_reference(src_seq, src_mask, params):
    hi = jax.lax.Precision.HIGHEST
    B, S, D = src_seq.shape
    x = src_seq + params["pos_table"][None, :S, :]
    x = _layer_norm_ref(x, params["ln_g"], params["ln_b"])
    attns = []
    for layer in params["layers"]:
        H = layer["n_head"]
        dk = layer["wq"].shape[1] // H
        dv = layer["wv"].shape[1] // H
        q = jnp.einsum("bsd,de->bse", x, layer["wq"],
                       precision=hi).reshape(B, S, H, dk).transpose(0, 2, 1, 3)
        k = jnp.einsum("bsd,de->bse", x, layer["wk"],
                       precision=hi).reshape(B, S, H, dk).transpose(0, 2, 1, 3)
        v = jnp.einsum("bsd,de->bse", x, layer["wv"],
                       precision=hi).reshape(B, S, H, dv).transpose(0, 2, 1, 3)
        s = jnp.einsum("bhqd,bhkd->bhqk", q / (dk ** 0.5), k, precision=hi)
        s = jnp.where(src_mask[:, None, :, :] == 0.0, _MASK_FILL, s)
        p = jax.nn.softmax(s, axis=-1)
        attns.append(p)
        o = jnp.einsum("bhqk,bhkd->bhqd", p, v, precision=hi)
        o = o.transpose(0, 2, 1, 3).reshape(B, S, H * dv)
        o = jnp.einsum("bse,ed->bsd", o, layer["wo"], precision=hi)
        x = _layer_norm_ref(o + x, layer["attn_ln_g"], layer["attn_ln_b"])
        hdn = jax.nn.relu(jnp.einsum("bsd,de->bse", x, layer["w1"],
                                     precision=hi) + layer["b1"])
        y = jnp.einsum("bse,ed->bsd", hdn, layer["w2"],
                       precision=hi) + layer["b2"] + x
        x = _layer_norm_ref(y, layer["ffn_ln_g"], layer["ffn_ln_b"])
    return x, attns


if __name__ == "__main__":
    # Module config: d_word_vec=d_model=32, n_layers=2, n_head=2, d_k=d_v=16,
    # d_inner=64, n_position=200.  Input: batch=2, seq=8.
    d_word_vec = d_model = 32
    n_layers = 2
    n_head = 2
    d_k = d_v = 16
    d_inner = 64
    n_position = 200
    B, S = 2, 8

    key = jax.random.PRNGKey(0)
    keys = jax.random.split(key, 2 + 12 * n_layers + 1)
    kit = iter(keys)

    def lin(k, fan_in, fan_out):
        return (jax.random.normal(k, (fan_in, fan_out), jnp.float32)
                / jnp.sqrt(jnp.float32(fan_in)))

    params = {
        "pos_table": make_sinusoid_table(n_position, d_word_vec),
        "ln_g": 1.0 + 0.1 * jax.random.normal(next(kit), (d_model,), jnp.float32),
        "ln_b": 0.1 * jax.random.normal(next(kit), (d_model,), jnp.float32),
        "layers": [],
    }
    for _ in range(n_layers):
        params["layers"].append({
            "n_head": n_head,
            "wq": lin(next(kit), d_model, n_head * d_k),
            "wk": lin(next(kit), d_model, n_head * d_k),
            "wv": lin(next(kit), d_model, n_head * d_v),
            "wo": lin(next(kit), n_head * d_v, d_model),
            "attn_ln_g": 1.0 + 0.1 * jax.random.normal(next(kit), (d_model,), jnp.float32),
            "attn_ln_b": 0.1 * jax.random.normal(next(kit), (d_model,), jnp.float32),
            "w1": lin(next(kit), d_model, d_inner),
            "b1": 0.1 * jax.random.normal(next(kit), (d_inner,), jnp.float32),
            "w2": lin(next(kit), d_inner, d_model),
            "b2": 0.1 * jax.random.normal(next(kit), (d_model,), jnp.float32),
            "ffn_ln_g": 1.0 + 0.1 * jax.random.normal(next(kit), (d_model,), jnp.float32),
            "ffn_ln_b": 0.1 * jax.random.normal(next(kit), (d_model,), jnp.float32),
        })

    src_seq = jax.random.normal(next(kit), (B, S, d_word_vec), jnp.float32)

    # Padding-style mask: batch 0 attends all 8 keys, batch 1 only the first 5.
    lengths = jnp.array([S, S - 3], dtype=jnp.int32)
    key_valid = (jnp.arange(S)[None, :] < lengths[:, None]).astype(jnp.float32)
    src_mask = jnp.tile(key_valid[:, None, :], (1, S, 1))          # (B, S, S)

    (enc_out,) = encoder_forward(src_seq, src_mask, params)
    enc_out = jax.block_until_ready(enc_out)

    ref_out, ref_attns = encoder_reference(src_seq, src_mask, params)

    assert enc_out.shape == (B, S, d_model)
    max_diff = float(jnp.max(jnp.abs(enc_out - ref_out)))
    assert jnp.allclose(enc_out, ref_out, atol=1e-4, rtol=1e-4), (
        f"output mismatch vs reference (max abs diff {max_diff})")

    out2, attn_list = encoder_forward(src_seq, src_mask, params, return_attns=True)
    out2 = jax.block_until_ready(out2)
    assert jnp.allclose(out2, ref_out, atol=1e-4, rtol=1e-4)
    for a, ra in zip(attn_list, ref_attns):
        assert a.shape == (B, n_head, S, S)
        assert jnp.allclose(a, ra, atol=1e-4, rtol=1e-4), "attention mismatch"

    print("KERNEL_OK")
</pallas_src>

<mosaic_0001>
module attributes {stable_mosaic.version = 11 : i64} {
  func.func @_prelude_kernel(%arg0: memref<2x8x32xf32, #tpu.memory_space<vmem>>, %arg1: memref<8x32xf32, #tpu.memory_space<vmem>>, %arg2: memref<1x32xf32, #tpu.memory_space<vmem>>, %arg3: memref<1x32xf32, #tpu.memory_space<vmem>>, %arg4: memref<2x8x32xf32, #tpu.memory_space<vmem>>) attributes {dimension_semantics = [], scalar_prefetch = 0 : i64, scratch_operands = 0 : i64, tpu.core_type = #tpu.core_type<tc>} {
    %c0 = arith.constant 0 : index
    %c0_0 = arith.constant 0 : index
    %c0_1 = arith.constant 0 : index
    %0 = vector.load %arg0[%c0, %c0_0, %c0_1] : memref<2x8x32xf32, #tpu.memory_space<vmem>>, vector<2x8x32xf32>
    %c0_2 = arith.constant 0 : index
    %c0_3 = arith.constant 0 : index
    %1 = vector.load %arg1[%c0_2, %c0_3] : memref<8x32xf32, #tpu.memory_space<vmem>>, vector<8x32xf32>
    %2 = vector.shape_cast %1 : vector<8x32xf32> to vector<1x8x32xf32>
    %3 = vector.broadcast %2 : vector<1x8x32xf32> to vector<2x8x32xf32>
    %4 = arith.addf %0, %3 : vector<2x8x32xf32>
    %c0_4 = arith.constant 0 : index
    %c0_5 = arith.constant 0 : index
    %5 = vector.load %arg2[%c0_4, %c0_5] : memref<1x32xf32, #tpu.memory_space<vmem>>, vector<1x32xf32>
    %c0_6 = arith.constant 0 : index
    %c0_7 = arith.constant 0 : index
    %6 = vector.load %arg3[%c0_6, %c0_7] : memref<1x32xf32, #tpu.memory_space<vmem>>, vector<1x32xf32>
    %cst = arith.constant dense<0.000000e+00> : vector<2x8xf32>
    %7 = vector.multi_reduction <add>, %4, %cst [2] : vector<2x8x32xf32> to vector<2x8xf32>
    %8 = vector.shape_cast %7 : vector<2x8xf32> to vector<2x8x1xf32>
    %cst_8 = arith.constant 3.200000e+01 : f32
    %9 = vector.broadcast %cst_8 : f32 to vector<2x8x1xf32>
    %10 = arith.divf %8, %9 : vector<2x8x1xf32>
    %11 = vector.broadcast %10 : vector<2x8x1xf32> to vector<2x8x32xf32>
    %12 = arith.subf %4, %11 : vector<2x8x32xf32>
    %13 = arith.mulf %12, %12 : vector<2x8x32xf32>
    %cst_9 = arith.constant dense<0.000000e+00> : vector<2x8xf32>
    %14 = vector.multi_reduction <add>, %13, %cst_9 [2] : vector<2x8x32xf32> to vector<2x8xf32>
    %15 = vector.shape_cast %14 : vector<2x8xf32> to vector<2x8x1xf32>
    %cst_10 = arith.constant 3.200000e+01 : f32
    %16 = vector.broadcast %cst_10 : f32 to vector<2x8x1xf32>
    %17 = arith.divf %15, %16 : vector<2x8x1xf32>
    %18 = vector.broadcast %10 : vector<2x8x1xf32> to vector<2x8x32xf32>
    %19 = arith.subf %4, %18 : vector<2x8x32xf32>
    %cst_11 = arith.constant 9.99999997E-7 : f32
    %20 = vector.broadcast %cst_11 : f32 to vector<2x8x1xf32>
    %21 = arith.addf %17, %20 : vector<2x8x1xf32>
    %22 = math.rsqrt %21 : vector<2x8x1xf32>
    %23 = vector.broadcast %22 : vector<2x8x1xf32> to vector<2x8x32xf32>
    %24 = arith.mulf %19, %23 : vector<2x8x32xf32>
    %25 = vector.shape_cast %5 : vector<1x32xf32> to vector<1x1x32xf32>
    %26 = vector.broadcast %25 : vector<1x1x32xf32> to vector<2x8x32xf32>
    %27 = arith.mulf %24, %26 : vector<2x8x32xf32>
    %28 = vector.shape_cast %6 : vector<1x32xf32> to vector<1x1x32xf32>
    %29 = vector.broadcast %28 : vector<1x1x32xf32> to vector<2x8x32xf32>
    %30 = arith.addf %27, %29 : vector<2x8x32xf32>
    %c0_12 = arith.constant 0 : index
    %c0_13 = arith.constant 0 : index
    %c0_14 = arith.constant 0 : index
    %31 = vector.load %arg4[%c0_12, %c0_13, %c0_14] : memref<2x8x32xf32, #tpu.memory_space<vmem>>, vector<2x8x32xf32>
    tpu.vector_store %arg4[%c0_12, %c0_13, %c0_14], %30 {strides = array<i32>} : memref<2x8x32xf32, #tpu.memory_space<vmem>>, vector<2x8x32xf32>,
    return
  }
}

</mosaic_0001>

<bundles_post_ra>
// kernel: tpu_custom_call.1
= control target key start
LH: loop header
LB: loop body
LE: loop exit
PB: predicated region body
PF: predicated region fallthrough
CT: control target
= control target key end

     0   :  { %9 = vsyncpa [#allocation3], 0  ;;  %s282_s0 = inlined_call_operand.hbm [shape: f32[2,8,32], index: 0, kind: input, shape index: {}]   ;;  %s283_s1 = inlined_call_operand.hbm [shape: f32[8,32], index: 1, kind: input, shape index: {}]   ;;  %s284_s2 = inlined_call_operand.vmem [shape: f32[1,32], index: 2, kind: input, shape index: {}]   ;;  %s285_s3 = inlined_call_operand.vmem [shape: f32[1,32], index: 3, kind: input, shape index: {}]   ;;  %s286_s4 = inlined_call_operand.hbm [shape: f32[2,8,32], index: 4, kind: output, shape index: {}]  }
   0x1   :  { %10 = vsyncpa [#allocation6], 0 }
   0x2   :  { %11 = vsyncpa [#allocation4], 0  ;;  %s198_s15 = smov [#allocation2]   ;;  %s126_s19 = scalar_lea.hbm %s282_s0, 256 }
   0x3   :  { %s17_s16 = sshll.u32 %s198_s15, 4  ;;  %p127_p0 = scmp.ne.s32.totalorder %s282_s0, %s126_s19  ;;  %s18_s16 = int_to_ptr.vmem [resolvable:$true] %s17_s16 }
   0x4   :  { %p130_p1 = scmp.lt.u32.totalorder %s126_s19, %s282_s0 }
   0x6   :  { %p132_p2 = pnand %p130_p1, %p127_p0 }
   0x8   :  { %135 = shalt.err (!%p132_p2)
}
   0x9   :  { %s136_s24 = scalar_lea.vmem %s18_s16, 256  ;;  %p141_p4 = scmp.lt.s32.totalorder %s18_s16, %s18_s16 }
   0xa   :  { %p137_p3 = scmp.ne.s32.totalorder %s18_s16, %s136_s24  ;;  %p142_p5 = scmp.lt.s32.totalorder %s136_s24, %s136_s24 }
   0xc   :  { %p143_p6 = por %p142_p5, %p141_p4 }
   0xe   :  { %p144_p7 = pnand %p143_p6, %p137_p3 }
  0x10   :  { %147 = shalt.err (!%p144_p7)
}
  0x11   :  { %s199_s25 = smov 128   ;;  %s200_s26 = smov 8  }
  0x12   :  { %23 = dma.hbm_to_vmem [thread:$0]  %s282_s0, 256, %s18_s16, [#allocation3], %s199_s25, %s199_s25, %s200_s26  }
  0x13   :  { %s201_s29 = smov [#allocation5]   ;;  %s148_s7 = scalar_lea.hbm %s283_s1, 128 }
  0x14   :  { %s30_s30 = sshll.u32 %s201_s29, 4  ;;  %p149_p8 = scmp.ne.s32.totalorder %s283_s1, %s148_s7  ;;  %s31_s30 = int_to_ptr.vmem [resolvable:$true] %s30_s30 }
  0x15   :  { %p152_p9 = scmp.lt.u32.totalorder %s148_s7, %s283_s1 }
  0x17   :  { %p154_p10 = pnand %p152_p9, %p149_p8 }
  0x19   :  { %157 = shalt.err (!%p154_p10)
}
  0x1a   :  { %s158_s12 = scalar_lea.vmem %s31_s30, 128  ;;  %p163_p12 = scmp.lt.s32.totalorder %s31_s30, %s31_s30 }
  0x1b   :  { %p159_p11 = scmp.ne.s32.totalorder %s31_s30, %s158_s12  ;;  %p164_p13 = scmp.lt.s32.totalorder %s158_s12, %s158_s12 }
  0x1d   :  { %p165_p0 = por %p164_p13, %p163_p12 }
  0x1f   :  { %p166_p1 = pnand %p165_p0, %p159_p11 }
  0x21   :  { %169 = shalt.err (!%p166_p1)
}
  0x22   :  { %33 = dma.hbm_to_vmem [thread:$0]  %s283_s1, 128, %s31_s30, [#allocation6]  }
  0x23   :  { %192 = dma.done.wait [#allocation3], 256  }
  0x24   :  { %193 = vsyncadd [#allocation3], 4294967040 }
  0x25   :  { %194 = dma.done.wait [#allocation6], 128  }
  0x26   :  { %195 = vsyncadd [#allocation6], 4294967168  ;;  %v44_v0 = vld [vmem:[#allocation2] sm:$0xff]  ;;  %v46_v1 = vld [vmem:[#allocation5] sm:$0xff]  ;;  %vm51_vm0 = vcmask 261120   ;;  %s202_s17 = smov [#allocation7]  }
  0x27   :  { %v45_v2 = vld [vmem:[#allocation2 + $0x8] sm:$0xff]  ;;  %v47_v3 = vadd.f32 %v46_v1, %v44_v0  ;;  %v115_v24 = vld [vmem:[%s284_s2] ss:$0 sm:$0xff]  ;;  %s102_s18 = sshll.u32 %s202_s17, 4  ;;  %s103_s18 = int_to_ptr.vmem [resolvable:$true] %s102_s18 }
  0x28   :  { %v48_v4 = vadd.f32 %v46_v1, %v45_v2  ;;  %v116_v26 = vld [vmem:[%s285_s3] ss:$0 sm:$0xff]  ;;  %s170_s19 = scalar_lea.vmem %s103_s18, 256  ;;  %p175_p3 = scmp.lt.s32.totalorder %s103_s18, %s103_s18 }
  0x29   :  { %v52_v5 = vsel %vm51_vm0, %v47_v3, 0.0  ;;  %p171_p2 = scmp.ne.s32.totalorder %s103_s18, %s170_s19  ;;  %p176_p4 = scmp.lt.s32.totalorder %s170_s19, %s170_s19 }
  0x2a   :  { %53 = vadd.xlane.f32.xlu0 %v52_v5  ;;  %v55_v6 = vsel %vm51_vm0, %v48_v4, 0.0 }
  0x2b   :  { %p177_p5 = por %p176_p4, %p175_p3 }
  0x2d   :  { %p178_p6 = pnand %p177_p5, %p171_p2 }
  0x2e   :  { %56 = vadd.xlane.f32.xlu0 %v55_v6 }
  0xb7   :  { %v54_v7 = vpop.xlane.xlu0 %53 }
  0xb8   :  { %v59_v8 = vmul.f32 0.03125, %v54_v7 }
  0xba   :  { %v61_v9 = vsub.f32 %v47_v3, %v59_v8 }
  0xbb   :  { %v57_v10 = vpop.xlane.xlu0 %56 }
  0xbc   :  { %v60_v11 = vmul.f32 0.03125, %v57_v10  ;;  %v63_v12 = vmul.f32 %v61_v9, %v61_v9 }
  0xbe   :  { %v62_v13 = vsub.f32 %v48_v4, %v60_v11  ;;  %v65_v14 = vsel %vm51_vm0, %v63_v12, 0.0 }
  0xbf   :  { %66 = vadd.xlane.f32.xlu1 %v65_v14 }
  0xc0   :  { %v64_v15 = vmul.f32 %v62_v13, %v62_v13 }
  0xc2   :  { %v68_v16 = vsel %vm51_vm0, %v64_v15, 0.0 }
  0xc3   :  { %69 = vadd.xlane.f32.xlu1 %v68_v16 }
 0x14c   :  { %v67_v17 = vpop.xlane.xlu1 %66 }
 0x14d   :  { %v71_v18 = vmul.f32 0.03125, %v67_v17 }
 0x14f   :  { %v73_v19 = vadd.f32 1e-06, %v71_v18 }
 0x150   :  { %v70_v20 = vpop.xlane.xlu1 %69 }
 0x151   :  { %122 = vrsqrt.f32 %v73_v19  ;;  %v72_v21 = vmul.f32 0.03125, %v70_v20 }
 0x153   :  { %v74_v22 = vadd.f32 1e-06, %v72_v21 }
 0x155   :  { %124 = vrsqrt.f32 %v74_v22 }
 0x15b   :  { %v123_v23 = vpop.eup %122 }
 0x15c   :  { %v77_v25 = vmul.f32 %v123_v23, %v61_v9 }
 0x15e   :  { %v85_v27 = vmul.f32 %v115_v24, %v77_v25 }
 0x15f   :  { %v125_v28 = vpop.eup %124 }
 0x160   :  { %v78_v29 = vmul.f32 %v125_v28, %v62_v13  ;;  %v93_v30 = vadd.f32 %v116_v26, %v85_v27 }
 0x162   :  { %v86_v31 = vmul.f32 %v115_v24, %v78_v29  ;;  %95 = vst.msk [vmem:[#allocation7] sm:$0xff] %vm51_vm0, %v93_v30 }
 0x164   :  { %v94_v32 = vadd.f32 %v116_v26, %v86_v31 }
 0x166   :  { %96 = vst.msk [vmem:[#allocation7 + $0x8] sm:$0xff] %vm51_vm0, %v94_v32 }
 0x167   :  { %181 = shalt.err (!%p178_p6)
}
 0x168   :  { %s182_s20 = scalar_lea.hbm %s286_s4, 256 }
 0x169   :  { %p183_p7 = scmp.ne.s32.totalorder %s286_s4, %s182_s20  ;;  %p186_p8 = scmp.lt.u32.totalorder %s182_s20, %s286_s4 }
 0x16b   :  { %p188_p9 = pnand %p186_p8, %p183_p7 }
 0x16d   :  { %191 = shalt.err (!%p188_p9)
}
 0x16e   :  { %108 = dma.vmem_to_hbm [thread:$0]  %s103_s18, 256, %s286_s4, [#allocation4], %s199_s25, %s199_s25, %s200_s26  }
 0x16f   :  { %196 = dma.done.wait [#allocation4], 256  }
 0x170   :  { %197 = vsyncadd [#allocation4], 4294967040 }
 0x171   :  { %112 = vsyncpa [#allocation3], 1 }
 0x172   :  { %113 = vsyncpa [#allocation6], 1 }
 0x173   :  { %114 = vsyncpa [#allocation4], 1 }

</bundles_post_ra>
